<compile_context>
chip_gen: v7x
topology: tpu7x:2x2x1
jax: 0.10.0
libtpu: 0.0.40
codegen_flags: <defaults>
</compile_context>

<pallas_src>
import math

import jax
import jax.numpy as jnp
from jax import lax
from jax.experimental import pallas as pl
from jax.experimental.pallas import tpu as pltpu

# --- small, self-consistent config (matches cfg of TransformerBlock) ---
B, S, D = 2, 8, 32          # batch, seq, hidden_dim (d_model)
D_QK = 32                   # cfg['state_dim']
NUM_HEADS = 4               # cfg['num_heads']
HEAD_DIM = D_QK // NUM_HEADS
V_DIM = D // NUM_HEADS
MLP_DIM = 64                # cfg['mlp_dim']
LN_EPS = 1e-5
SOFTMAX_SCALE = 1.0 / math.sqrt(HEAD_DIM)
BS = B * S                  # flattened tokens
HBS = NUM_HEADS * BS        # rows of the (head, batch, t)-stacked score slab


def _layernorm(z, w, b):
    mu = jnp.mean(z, axis=-1, keepdims=True)
    var = jnp.mean((z - mu) ** 2, axis=-1, keepdims=True)
    return (z - mu) * lax.rsqrt(var + LN_EPS) * w + b


def transformer_block_kernel(x_ref, wqkv_ref, bqkv_ref, wo_ref, bo_ref,
                             ln_w_ref, ln_b_ref, w1_ref, b1_ref, w2_ref,
                             b2_ref, a_mask_ref, add_mask_ref, ctx_mask_ref,
                             lambd_ref, o_ref):
    x = x_ref[...]                     # (B*S, D)
    ln_w = ln_w_ref[...]               # (1, D)
    ln_b = ln_b_ref[...]               # (1, D)
    lambd = lambd_ref[0]               # scalar from SMEM

    skip = lambd * x

    # ---- attention branch: x = norm(x); x = MHA(x); x = x + skip ----
    xn = _layernorm(x, ln_w, ln_b)
    # single fused projection: [q | k | v] along lanes -> (B*S, 2*D_QK + D)
    qkv = jnp.dot(xn, wqkv_ref[...], preferred_element_type=jnp.float32) + bqkv_ref[...]
    q_all = qkv[:, :D_QK]                              # (B*S, D_QK)
    k_all = qkv[:, D_QK:2 * D_QK] * SOFTMAX_SCALE      # scale hoisted, applied once
    v_all = qkv[:, 2 * D_QK:]                          # (B*S, D)

    # ---- ONE block-diagonal score matmul for every (batch, head) ----
    # Row r = h*BS + b*S + t of A holds q[b, t] masked to head h's columns.
    q_tiled = jnp.concatenate([q_all] * NUM_HEADS, axis=0)          # (HBS, D_QK)
    a = a_mask_ref[...] * q_tiled                                    # head block-diag
    # scores[h*BS+b*S+t, b'*S+s] = scale * sum_d q[b,t,h,d] * k[b',s,h,d]
    scores = lax.dot_general(a, k_all, (((1,), (1,)), ((), ())),
                             preferred_element_type=jnp.float32)     # (HBS, B*S)
    scores = scores + add_mask_ref[...]   # causal + cross-batch -10000 (precomputed)

    m = jnp.max(scores, axis=-1, keepdims=True)
    p = jnp.exp(scores - m)                      # masked entries underflow to 0
    denom = jnp.sum(p, axis=-1, keepdims=True)
    inv = pl.reciprocal(denom, approx=True)      # EUP slot (has slack next to exp)
    inv = inv * (2.0 - denom * inv)              # one Newton step -> full f32 accuracy
    attn = p * inv                               # (HBS, B*S)

    # ---- ONE attn@V matmul, then single diagonal-head extraction ----
    pfull = jnp.dot(attn, v_all, preferred_element_type=jnp.float32)  # (HBS, D)
    masked = ctx_mask_ref[...] * pfull           # keep head-h value columns in row-block h
    ctx = masked[:BS, :]                         # sum the NUM_HEADS sublane row blocks
    for h in range(1, NUM_HEADS):
        ctx = ctx + masked[h * BS:(h + 1) * BS, :]                    # (B*S, D)

    attn_out = jnp.dot(ctx, wo_ref[...], preferred_element_type=jnp.float32) + bo_ref[...]
    x2 = attn_out + skip                   # residual (dropout = identity)

    # ---- MLP branch: y = norm(x2); y = MLP(y); out = x2 + y ----
    # TODO(synk): MLP class body not provided; assuming Linear -> GELU(tanh) ->
    # Linear with eval-mode dropout.
    yn = _layernorm(x2, ln_w, ln_b)
    h1 = jnp.dot(yn, w1_ref[...], preferred_element_type=jnp.float32) + b1_ref[...]
    h1 = jax.nn.gelu(h1, approximate=True)
    y = jnp.dot(h1, w2_ref[...], preferred_element_type=jnp.float32) + b2_ref[...]

    o_ref[...] = x2 + y


def _build_masks():
    # Row r of the stacked slab decodes as (h, b, t) = (r // BS, (r % BS) // S, r % S).
    row = jnp.arange(HBS)
    row_h = row // BS
    row_bt = row % BS
    row_b = row_bt // S
    row_t = row_bt % S

    # head block mask over q columns: keep head-h columns in row-block h
    col_qk = jnp.arange(D_QK)
    a_mask = (row_h[:, None] == (col_qk[None, :] // HEAD_DIM)).astype(jnp.float32)

    # combined causal + cross-batch additive mask over context columns (b'*S + s)
    col = jnp.arange(BS)
    col_b = col // S
    col_s = col % S
    valid = (row_b[:, None] == col_b[None, :]) & (col_s[None, :] <= row_t[:, None])
    add_mask = jnp.where(valid, 0.0, -10000.0).astype(jnp.float32)

    # diagonal-head extraction mask over value columns
    col_d = jnp.arange(D)
    ctx_mask = (row_h[:, None] == (col_d[None, :] // V_DIM)).astype(jnp.float32)
    return a_mask, add_mask, ctx_mask


def prepare_params(params):
    """One-time preprocessing: fuse Wqk|Wv, precompute masks (outside the jitted path)."""
    wqk, bqk, wv, bv, wo, bo, ln_w, ln_b, w1, b1, w2, b2, lambd = params
    wqkv = jnp.concatenate([wqk, wv], axis=1)       # (D, 2*D_QK + D)
    bqkv = jnp.concatenate([bqk, bv], axis=1)       # (1, 2*D_QK + D)
    a_mask, add_mask, ctx_mask = _build_masks()
    lambd1 = lambd.reshape((1,))                    # scalar -> SMEM
    return (wqkv, bqkv, wo, bo, ln_w, ln_b, w1, b1, w2, b2,
            a_mask, add_mask, ctx_mask, lambd1)


@jax.jit
def transformer_block(x, prepped):
    (wqkv, bqkv, wo, bo, ln_w, ln_b, w1, b1, w2, b2,
     a_mask, add_mask, ctx_mask, lambd1) = prepped

    x2d = x.reshape(BS, D)             # free reshape outside the kernel

    vmem = pltpu.MemorySpace.VMEM
    smem = pltpu.MemorySpace.SMEM
    in_specs = [pl.BlockSpec(memory_space=vmem)] * 14 + \
               [pl.BlockSpec(memory_space=smem)]

    out = pl.pallas_call(
        transformer_block_kernel,
        out_shape=jax.ShapeDtypeStruct((BS, D), jnp.float32),
        in_specs=in_specs,
        out_specs=pl.BlockSpec(memory_space=vmem),
    )(x2d, wqkv, bqkv, wo, bo, ln_w, ln_b, w1, b1, w2, b2,
      a_mask, add_mask, ctx_mask, lambd1)

    return out.reshape(B, S, D)


def init_params(key):
    # deterministic init mimicking PyTorch Linear default U(-1/sqrt(fan_in), +)
    keys = jax.random.split(key, 5)

    def linear(k, fan_in, fan_out):
        bound = 1.0 / math.sqrt(fan_in)
        kw, kb = jax.random.split(k)
        w = jax.random.uniform(kw, (fan_in, fan_out), jnp.float32, -bound, bound)
        b = jax.random.uniform(kb, (1, fan_out), jnp.float32, -bound, bound)
        return w, b

    wqk, bqk = linear(keys[0], D, 2 * D_QK)     # Wqk: Linear(d_model, 2*d_qk)
    wv, bv = linear(keys[1], D, D)              # Wv:  Linear(d_model, d_model)
    wo, bo = linear(keys[2], D, D)              # out_proj
    w1, b1 = linear(keys[3], D, MLP_DIM)        # MLP fc1
    w2, b2 = linear(keys[4], MLP_DIM, D)        # MLP fc2
    ln_w = jnp.ones((1, D), jnp.float32)        # LayerNorm weight (shared norm module)
    ln_b = jnp.zeros((1, D), jnp.float32)       # LayerNorm bias
    lambd = jnp.ones((1, 1), jnp.float32)       # lambd parameter
    return (wqk, bqk, wv, bv, wo, bo, ln_w, ln_b, w1, b1, w2, b2, lambd)


def reference(x, params):
    # pure-JAX reference mirroring the PyTorch forward exactly (eval mode)
    wqk, bqk, wv, bv, wo, bo, ln_w, ln_b, w1, b1, w2, b2, lambd = params

    def ln(z):
        mu = z.mean(-1, keepdims=True)
        var = ((z - mu) ** 2).mean(-1, keepdims=True)
        return (z - mu) / jnp.sqrt(var + LN_EPS) * ln_w[0] + ln_b[0]

    skip = lambd[0, 0] * x
    xn = ln(x)
    qk = xn @ wqk + bqk[0]
    v = xn @ wv + bv[0]
    qk = qk.reshape(B, S, 2, NUM_HEADS, HEAD_DIM)
    q, k = qk[:, :, 0], qk[:, :, 1]
    vh = v.reshape(B, S, NUM_HEADS, V_DIM)
    scores = jnp.einsum('bthd,bshd->bhts', q, k * SOFTMAX_SCALE)
    mask = jnp.triu(jnp.full((S, S), -10000.0, dtype=jnp.float32), 1)
    scores = scores + mask
    attn = jax.nn.softmax(scores, axis=-1)
    ctx = jnp.einsum('bhts,bshd->bthd', attn, vh).reshape(B, S, D)
    x2 = ctx @ wo + bo[0] + skip
    yn = ln(x2)
    y = jax.nn.gelu(yn @ w1 + b1[0], approximate=True) @ w2 + b2[0]
    return x2 + y


if __name__ == "__main__":
    key = jax.random.PRNGKey(0)
    kx, kp = jax.random.split(key)
    x = jax.random.normal(kx, (B, S, D), jnp.float32)
    params = init_params(kp)
    prepped = prepare_params(params)

    out = jax.block_until_ready(transformer_block(x, prepped))
    ref = reference(x, params)

    assert out.shape == (B, S, D)
    err = float(jnp.max(jnp.abs(out - ref)))
    assert jnp.allclose(out, ref, atol=5e-4, rtol=5e-4), f"max abs err {err}"
    print("KERNEL_OK")
</pallas_src>

<mosaic_0001>
module attributes {stable_mosaic.version = 11 : i64} {
  func.func @transformer_block_kernel(%arg0: memref<16x32xf32, #tpu.memory_space<vmem>>, %arg1: memref<32x96xf32, #tpu.memory_space<vmem>>, %arg2: memref<1x96xf32, #tpu.memory_space<vmem>>, %arg3: memref<32x32xf32, #tpu.memory_space<vmem>>, %arg4: memref<1x32xf32, #tpu.memory_space<vmem>>, %arg5: memref<1x32xf32, #tpu.memory_space<vmem>>, %arg6: memref<1x32xf32, #tpu.memory_space<vmem>>, %arg7: memref<32x64xf32, #tpu.memory_space<vmem>>, %arg8: memref<1x64xf32, #tpu.memory_space<vmem>>, %arg9: memref<64x32xf32, #tpu.memory_space<vmem>>, %arg10: memref<1x32xf32, #tpu.memory_space<vmem>>, %arg11: memref<64x32xf32, #tpu.memory_space<vmem>>, %arg12: memref<64x16xf32, #tpu.memory_space<vmem>>, %arg13: memref<64x32xf32, #tpu.memory_space<vmem>>, %arg14: memref<1xf32, #tpu.memory_space<smem>>, %arg15: memref<16x32xf32, #tpu.memory_space<vmem>>) attributes {dimension_semantics = [], scalar_prefetch = 0 : i64, scratch_operands = 0 : i64, tpu.core_type = #tpu.core_type<tc>} {
    %c0 = arith.constant 0 : index
    %c0_0 = arith.constant 0 : index
    %0 = vector.load %arg0[%c0, %c0_0] : memref<16x32xf32, #tpu.memory_space<vmem>>, vector<16x32xf32>
    %c0_1 = arith.constant 0 : index
    %c0_2 = arith.constant 0 : index
    %1 = vector.load %arg5[%c0_1, %c0_2] : memref<1x32xf32, #tpu.memory_space<vmem>>, vector<1x32xf32>
    %c0_3 = arith.constant 0 : index
    %c0_4 = arith.constant 0 : index
    %2 = vector.load %arg6[%c0_3, %c0_4] : memref<1x32xf32, #tpu.memory_space<vmem>>, vector<1x32xf32>
    %c0_5 = arith.constant 0 : index
    %3 = memref.load %arg14[%c0_5] : memref<1xf32, #tpu.memory_space<smem>>
    %4 = vector.broadcast %3 : f32 to vector<16x32xf32>
    %5 = arith.mulf %4, %0 : vector<16x32xf32>
    %cst = arith.constant dense<0.000000e+00> : vector<16xf32>
    %6 = vector.multi_reduction <add>, %0, %cst [1] : vector<16x32xf32> to vector<16xf32>
    %7 = vector.shape_cast %6 : vector<16xf32> to vector<16x1xf32>
    %cst_6 = arith.constant 3.200000e+01 : f32
    %8 = vector.broadcast %cst_6 : f32 to vector<16x1xf32>
    %9 = arith.divf %7, %8 : vector<16x1xf32>
    %10 = vector.broadcast %9 : vector<16x1xf32> to vector<16x32xf32>
    %11 = arith.subf %0, %10 : vector<16x32xf32>
    %12 = arith.mulf %11, %11 : vector<16x32xf32>
    %cst_7 = arith.constant dense<0.000000e+00> : vector<16xf32>
    %13 = vector.multi_reduction <add>, %12, %cst_7 [1] : vector<16x32xf32> to vector<16xf32>
    %14 = vector.shape_cast %13 : vector<16xf32> to vector<16x1xf32>
    %cst_8 = arith.constant 3.200000e+01 : f32
    %15 = vector.broadcast %cst_8 : f32 to vector<16x1xf32>
    %16 = arith.divf %14, %15 : vector<16x1xf32>
    %17 = vector.broadcast %9 : vector<16x1xf32> to vector<16x32xf32>
    %18 = arith.subf %0, %17 : vector<16x32xf32>
    %cst_9 = arith.constant 9.99999974E-6 : f32
    %19 = vector.broadcast %cst_9 : f32 to vector<16x1xf32>
    %20 = arith.addf %16, %19 : vector<16x1xf32>
    %21 = math.rsqrt %20 : vector<16x1xf32>
    %22 = vector.broadcast %21 : vector<16x1xf32> to vector<16x32xf32>
    %23 = arith.mulf %18, %22 : vector<16x32xf32>
    %24 = vector.broadcast %1 : vector<1x32xf32> to vector<16x32xf32>
    %25 = arith.mulf %23, %24 : vector<16x32xf32>
    %26 = vector.broadcast %2 : vector<1x32xf32> to vector<16x32xf32>
    %27 = arith.addf %25, %26 : vector<16x32xf32>
    %c0_10 = arith.constant 0 : index
    %c0_11 = arith.constant 0 : index
    %28 = vector.load %arg1[%c0_10, %c0_11] : memref<32x96xf32, #tpu.memory_space<vmem>>, vector<32x96xf32>
    %cst_12 = arith.constant dense<0.000000e+00> : vector<16x96xf32>
    %29 = tpu.matmul %27, %28, %cst_12 {dimension_numbers = #tpu.dot_dimension_numbers<[1], [0], [0], [1], [0, 0, 1, 1], [], []>} : vector<16x32xf32>, vector<32x96xf32>, vector<16x96xf32> -> vector<16x96xf32>
    %c0_13 = arith.constant 0 : index
    %c0_14 = arith.constant 0 : index
    %30 = vector.load %arg2[%c0_13, %c0_14] : memref<1x96xf32, #tpu.memory_space<vmem>>, vector<1x96xf32>
    %31 = vector.broadcast %30 : vector<1x96xf32> to vector<16x96xf32>
    %32 = arith.addf %29, %31 : vector<16x96xf32>
    %33 = vector.extract_strided_slice %32 {offsets = [0, 0], sizes = [16, 32], strides = [1, 1]} : vector<16x96xf32> to vector<16x32xf32>
    %34 = vector.extract_strided_slice %32 {offsets = [0, 32], sizes = [16, 32], strides = [1, 1]} : vector<16x96xf32> to vector<16x32xf32>
    %cst_15 = arith.constant 0.353553385 : f32
    %35 = vector.broadcast %cst_15 : f32 to vector<16x32xf32>
    %36 = arith.mulf %34, %35 : vector<16x32xf32>
    %37 = vector.extract_strided_slice %32 {offsets = [0, 64], sizes = [16, 32], strides = [1, 1]} : vector<16x96xf32> to vector<16x32xf32>
    %38 = tpu.concatenate %33, %33, %33, %33 in 0 : vector<16x32xf32>, vector<16x32xf32>, vector<16x32xf32>, vector<16x32xf32> -> vector<64x32xf32>
    %c0_16 = arith.constant 0 : index
    %c0_17 = arith.constant 0 : index
    %39 = vector.load %arg11[%c0_16, %c0_17] : memref<64x32xf32, #tpu.memory_space<vmem>>, vector<64x32xf32>
    %40 = arith.mulf %39, %38 : vector<64x32xf32>
    %cst_18 = arith.constant dense<0.000000e+00> : vector<64x16xf32>
    %41 = tpu.matmul %40, %36, %cst_18 {dimension_numbers = #tpu.dot_dimension_numbers<[1], [1], [0], [0], [0, 0, 1, 0], [], []>} : vector<64x32xf32>, vector<16x32xf32>, vector<64x16xf32> -> vector<64x16xf32>
    %c0_19 = arith.constant 0 : index
    %c0_20 = arith.constant 0 : index
    %42 = vector.load %arg12[%c0_19, %c0_20] : memref<64x16xf32, #tpu.memory_space<vmem>>, vector<64x16xf32>
    %43 = arith.addf %41, %42 : vector<64x16xf32>
    %cst_21 = arith.constant dense<0xFF800000> : vector<64xf32>
    %44 = vector.multi_reduction <maximumf>, %43, %cst_21 [1] : vector<64x16xf32> to vector<64xf32>
    %45 = vector.shape_cast %44 : vector<64xf32> to vector<64x1xf32>
    %46 = vector.broadcast %45 : vector<64x1xf32> to vector<64x16xf32>
    %47 = arith.subf %43, %46 : vector<64x16xf32>
    %48 = math.exp %47 : vector<64x16xf32>
    %cst_22 = arith.constant dense<0.000000e+00> : vector<64xf32>
    %49 = vector.multi_reduction <add>, %48, %cst_22 [1] : vector<64x16xf32> to vector<64xf32>
    %50 = vector.shape_cast %49 : vector<64xf32> to vector<64x1xf32>
    %51 = tpu.reciprocal %50 {approx = true} : vector<64x1xf32> -> vector<64x1xf32>
    %52 = arith.mulf %50, %51 : vector<64x1xf32>
    %cst_23 = arith.constant 2.000000e+00 : f32
    %53 = vector.broadcast %cst_23 : f32 to vector<64x1xf32>
    %54 = arith.subf %53, %52 : vector<64x1xf32>
    %55 = arith.mulf %51, %54 : vector<64x1xf32>
    %56 = vector.broadcast %55 : vector<64x1xf32> to vector<64x16xf32>
    %57 = arith.mulf %48, %56 : vector<64x16xf32>
    %cst_24 = arith.constant dense<0.000000e+00> : vector<64x32xf32>
    %58 = tpu.matmul %57, %37, %cst_24 {dimension_numbers = #tpu.dot_dimension_numbers<[1], [0], [0], [1], [0, 0, 1, 1], [], []>} : vector<64x16xf32>, vector<16x32xf32>, vector<64x32xf32> -> vector<64x32xf32>
    %c0_25 = arith.constant 0 : index
    %c0_26 = arith.constant 0 : index
    %59 = vector.load %arg13[%c0_25, %c0_26] : memref<64x32xf32, #tpu.memory_space<vmem>>, vector<64x32xf32>
    %60 = arith.mulf %59, %58 : vector<64x32xf32>
    %61 = vector.extract_strided_slice %60 {offsets = [0, 0], sizes = [16, 32], strides = [1, 1]} : vector<64x32xf32> to vector<16x32xf32>
    %62 = vector.extract_strided_slice %60 {offsets = [16, 0], sizes = [16, 32], strides = [1, 1]} : vector<64x32xf32> to vector<16x32xf32>
    %63 = arith.addf %61, %62 : vector<16x32xf32>
    %64 = vector.extract_strided_slice %60 {offsets = [32, 0], sizes = [16, 32], strides = [1, 1]} : vector<64x32xf32> to vector<16x32xf32>
    %65 = arith.addf %63, %64 : vector<16x32xf32>
    %66 = vector.extract_strided_slice %60 {offsets = [48, 0], sizes = [16, 32], strides = [1, 1]} : vector<64x32xf32> to vector<16x32xf32>
    %67 = arith.addf %65, %66 : vector<16x32xf32>
    %c0_27 = arith.constant 0 : index
    %c0_28 = arith.constant 0 : index
    %68 = vector.load %arg3[%c0_27, %c0_28] : memref<32x32xf32, #tpu.memory_space<vmem>>, vector<32x32xf32>
    %cst_29 = arith.constant dense<0.000000e+00> : vector<16x32xf32>
    %69 = tpu.matmul %67, %68, %cst_29 {dimension_numbers = #tpu.dot_dimension_numbers<[1], [0], [0], [1], [0, 0, 1, 1], [], []>} : vector<16x32xf32>, vector<32x32xf32>, vector<16x32xf32> -> vector<16x32xf32>
    %c0_30 = arith.constant 0 : index
    %c0_31 = arith.constant 0 : index
    %70 = vector.load %arg4[%c0_30, %c0_31] : memref<1x32xf32, #tpu.memory_space<vmem>>, vector<1x32xf32>
    %71 = vector.broadcast %70 : vector<1x32xf32> to vector<16x32xf32>
    %72 = arith.addf %69, %71 : vector<16x32xf32>
    %73 = arith.addf %72, %5 : vector<16x32xf32>
    %cst_32 = arith.constant dense<0.000000e+00> : vector<16xf32>
    %74 = vector.multi_reduction <add>, %73, %cst_32 [1] : vector<16x32xf32> to vector<16xf32>
    %75 = vector.shape_cast %74 : vector<16xf32> to vector<16x1xf32>
    %cst_33 = arith.constant 3.200000e+01 : f32
    %76 = vector.broadcast %cst_33 : f32 to vector<16x1xf32>
    %77 = arith.divf %75, %76 : vector<16x1xf32>
    %78 = vector.broadcast %77 : vector<16x1xf32> to vector<16x32xf32>
    %79 = arith.subf %73, %78 : vector<16x32xf32>
    %80 = arith.mulf %79, %79 : vector<16x32xf32>
    %cst_34 = arith.constant dense<0.000000e+00> : vector<16xf32>
    %81 = vector.multi_reduction <add>, %80, %cst_34 [1] : vector<16x32xf32> to vector<16xf32>
    %82 = vector.shape_cast %81 : vector<16xf32> to vector<16x1xf32>
    %cst_35 = arith.constant 3.200000e+01 : f32
    %83 = vector.broadcast %cst_35 : f32 to vector<16x1xf32>
    %84 = arith.divf %82, %83 : vector<16x1xf32>
    %85 = vector.broadcast %77 : vector<16x1xf32> to vector<16x32xf32>
    %86 = arith.subf %73, %85 : vector<16x32xf32>
    %cst_36 = arith.constant 9.99999974E-6 : f32
    %87 = vector.broadcast %cst_36 : f32 to vector<16x1xf32>
    %88 = arith.addf %84, %87 : vector<16x1xf32>
    %89 = math.rsqrt %88 : vector<16x1xf32>
    %90 = vector.broadcast %89 : vector<16x1xf32> to vector<16x32xf32>
    %91 = arith.mulf %86, %90 : vector<16x32xf32>
    %92 = vector.broadcast %1 : vector<1x32xf32> to vector<16x32xf32>
    %93 = arith.mulf %91, %92 : vector<16x32xf32>
    %94 = vector.broadcast %2 : vector<1x32xf32> to vector<16x32xf32>
    %95 = arith.addf %93, %94 : vector<16x32xf32>
    %c0_37 = arith.constant 0 : index
    %c0_38 = arith.constant 0 : index
    %96 = vector.load %arg7[%c0_37, %c0_38] : memref<32x64xf32, #tpu.memory_space<vmem>>, vector<32x64xf32>
    %cst_39 = arith.constant dense<0.000000e+00> : vector<16x64xf32>
    %97 = tpu.matmul %95, %96, %cst_39 {dimension_numbers = #tpu.dot_dimension_numbers<[1], [0], [0], [1], [0, 0, 1, 1], [], []>} : vector<16x32xf32>, vector<32x64xf32>, vector<16x64xf32> -> vector<16x64xf32>
    %c0_40 = arith.constant 0 : index
    %c0_41 = arith.constant 0 : index
    %98 = vector.load %arg8[%c0_40, %c0_41] : memref<1x64xf32, #tpu.memory_space<vmem>>, vector<1x64xf32>
    %99 = vector.broadcast %98 : vector<1x64xf32> to vector<16x64xf32>
    %100 = arith.addf %97, %99 : vector<16x64xf32>
    %101 = arith.mulf %100, %100 : vector<16x64xf32>
    %102 = arith.mulf %100, %101 : vector<16x64xf32>
    %cst_42 = arith.constant 4.471500e-02 : f32
    %103 = vector.broadcast %cst_42 : f32 to vector<16x64xf32>
    %104 = arith.mulf %103, %102 : vector<16x64xf32>
    %105 = arith.addf %100, %104 : vector<16x64xf32>
    %cst_43 = arith.constant 0.797884583 : f32
    %106 = vector.broadcast %cst_43 : f32 to vector<16x64xf32>
    %107 = arith.mulf %106, %105 : vector<16x64xf32>
    %108 = math.tanh %107 : vector<16x64xf32>
    %cst_44 = arith.constant 1.000000e+00 : f32
    %109 = vector.broadcast %cst_44 : f32 to vector<16x64xf32>
    %110 = arith.addf %109, %108 : vector<16x64xf32>
    %cst_45 = arith.constant 5.000000e-01 : f32
    %111 = vector.broadcast %cst_45 : f32 to vector<16x64xf32>
    %112 = arith.mulf %111, %110 : vector<16x64xf32>
    %113 = arith.mulf %100, %112 : vector<16x64xf32>
    %c0_46 = arith.constant 0 : index
    %c0_47 = arith.constant 0 : index
    %114 = vector.load %arg9[%c0_46, %c0_47] : memref<64x32xf32, #tpu.memory_space<vmem>>, vector<64x32xf32>
    %cst_48 = arith.constant dense<0.000000e+00> : vector<16x32xf32>
    %115 = tpu.matmul %113, %114, %cst_48 {dimension_numbers = #tpu.dot_dimension_numbers<[1], [0], [0], [1], [0, 0, 1, 1], [], []>} : vector<16x64xf32>, vector<64x32xf32>, vector<16x32xf32> -> vector<16x32xf32>
    %c0_49 = arith.constant 0 : index
    %c0_50 = arith.constant 0 : index
    %116 = vector.load %arg10[%c0_49, %c0_50] : memref<1x32xf32, #tpu.memory_space<vmem>>, vector<1x32xf32>
    %117 = vector.broadcast %116 : vector<1x32xf32> to vector<16x32xf32>
    %118 = arith.addf %115, %117 : vector<16x32xf32>
    %119 = arith.addf %73, %118 : vector<16x32xf32>
    %c0_51 = arith.constant 0 : index
    %c0_52 = arith.constant 0 : index
    %120 = vector.load %arg15[%c0_51, %c0_52] : memref<16x32xf32, #tpu.memory_space<vmem>>, vector<16x32xf32>
    tpu.vector_store %arg15[%c0_51, %c0_52], %119 {strides = array<i32>} : memref<16x32xf32, #tpu.memory_space<vmem>>, vector<16x32xf32>,
    return
  }
}

</mosaic_0001>

<bundles_post_ra>
// kernel: transformer_block.1
= control target key start
LH: loop header
LB: loop body
LE: loop exit
PB: predicated region body
PF: predicated region fallthrough
CT: control target
= control target key end

     0   :  { %vm60_vm0 = vcmask 261120   ;;  %s1668_s0 = inlined_call_operand.vmem [shape: f32[16,32], index: 0, kind: input, shape index: {}]   ;;  %s1669_s1 = inlined_call_operand.vmem [shape: f32[32,96], index: 1, kind: input, shape index: {}]   ;;  %s1670_s2 = inlined_call_operand.vmem [shape: f32[1,96], index: 2, kind: input, shape index: {}]   ;;  %s1671_s3 = inlined_call_operand.vmem [shape: f32[32,32], index: 3, kind: input, shape index: {}]   ;;  %s1672_s4 = inlined_call_operand.vmem [shape: f32[1,32], index: 4, kind: input, shape index: {}]   ;;  %s1673_s5 = inlined_call_operand.vmem [shape: f32[1,32], index: 5, kind: input, shape index: {}]   ;;  %s1674_s6 = inlined_call_operand.vmem [shape: f32[1,32], index: 6, kind: input, shape index: {}]   ;;  %s1675_s7 = inlined_call_operand.vmem [shape: f32[32,64], index: 7, kind: input, shape index: {}]   ;;  %s1676_s8 = inlined_call_operand.vmem [shape: f32[1,64], index: 8, kind: input, shape index: {}]   ;;  %s1677_s9 = inlined_call_operand.vmem [shape: f32[64,32], index: 9, kind: input, shape index: {}]   ;;  %s1678_s10 = inlined_call_operand.vmem [shape: f32[1,32], index: 10, kind: input, shape index: {}]   ;;  %s1679_s11 = inlined_call_operand.vmem [shape: f32[64,32], index: 11, kind: input, shape index: {}]   ;;  %s1680_s12 = inlined_call_operand.vmem [shape: f32[64,16], index: 12, kind: input, shape index: {}]   ;;  %s1681_s13 = inlined_call_operand.vmem [shape: f32[64,32], index: 13, kind: input, shape index: {}]   ;;  %s1682_s14 = inlined_call_operand.<no memory space> [shape: f32[1], index: 14, kind: input, shape index: {}]   ;;  %s1683_s15 = inlined_call_operand.hbm [shape: f32[16,32], index: 15, kind: output, shape index: {}]  }
   0x1   :  { %v1371_v0 = vld [vmem:[%s1668_s0] sm:$0xff]  ;;  %v1376_v1 = vld [vmem:[%s1668_s0 + $0x8] sm:$0xff] }
   0x2   :  { %21 = vsyncpa [#allocation4], 0  ;;  %v61_v2 = vsel %vm60_vm0, %v1371_v0, 0.0  ;;  %v64_v3 = vsel %vm60_vm0, %v1376_v1, 0.0  ;;  %v104_v14 = vld [vmem:[%s1669_s1] sm:$0xff]  ;;  %v105_v15 = vld [vmem:[%s1669_s1 + $0x8] sm:$0xff] }
   0x3   :  { %62 = vadd.xlane.f32.xlu0 %v61_v2  ;;  %v106_v16 = vld [vmem:[%s1669_s1 + $0x10] sm:$0xff]  ;;  %v1148_v17 = vpack.c.bf16 %v105_v15, %v104_v14  ;;  %v107_v18 = vld [vmem:[%s1669_s1 + $0x18] sm:$0xff]  ;;  %v1401_v27 = vld [vmem:[%s1673_s5] ss:$0 sm:$0xff]  ;;  %vm361_vm2 = vcmask 130048   ;;  %vm882_vm3 = vcmask 523264  }
   0x4   :  { %v1152_v19 = vpack.c.bf16 %v107_v18, %v106_v16  ;;  %v1406_v29 = vld [vmem:[%s1674_s6] ss:$0 sm:$0xff]  ;;  %v200_v41 = vld [vmem:[%s1679_s11 + $0x10] sm:$0xff]  ;;  %vm1157_vm1 = vmpackc.low %vm60_vm0, %vm60_vm0  ;;  %s1285_s1 = smov [#allocation3]  }
   0x5   :  { %1149 = vmatprep.subr.bf16.mxu0 %v1148_v17  ;;  %v986_v36 = vld [vmem:[%s1670_s2] ss:$0 sm:$0xff]  ;;  %s1283_s2 = smov 96   ;;  %v199_v53 = vld [vmem:[%s1679_s11 + $0x8] sm:$0xff]  ;;  %v201_v54 = vld [vmem:[%s1679_s11 + $0x18] sm:$0xff] }
   0x6   :  { %1151 = vmatpush3.bf16.msra.mxu0 %v1148_v17  ;;  %v198_v40 = vld [vmem:[%s1679_s11] sm:$0xff]  ;;  %v203_v59 = vld [vmem:[%s1679_s11 + $0x28] sm:$0xff]  ;;  %v204_v60 = vld [vmem:[%s1679_s11 + $0x30] sm:$0xff] }
   0x7   :  { %65 = vadd.xlane.f32.xlu0 %v64_v3  ;;  %1153 = vmatprep.subr.bf16.mxu0 %v1152_v19  ;;  %v202_v55 = vld [vmem:[%s1679_s11 + $0x20] sm:$0xff]  ;;  %v205_v63 = vld [vmem:[%s1679_s11 + $0x38] sm:$0xff]  ;;  %v215_v3 = vld [vmem:[%s1680_s12 + $0x8] sm:$0xff] }
   0x8   :  { %v220_v17 = vld [vmem:[%s1680_s12 + $0x30] sm:$0xff] }
   0x9   :  { %v216_v18 = vld [vmem:[%s1680_s12 + $0x10] sm:$0xff] }
   0xa   :  { %1155 = vmatpush3.bf16.msra.mxu0 %v1152_v19 }
  0x90   :  { %v63_v4 = vpop.xlane.xlu0 %62 }
  0x91   :  { %v68_v5 = vmul.f32 0.03125, %v63_v4 }
  0x93   :  { %v70_v6 = vsub.f32 %v1371_v0, %v68_v5  ;;  %v217_v5 = vld [vmem:[%s1680_s12 + $0x18] sm:$0xff] }
  0x94   :  { %v66_v7 = vpop.xlane.xlu0 %65 }
  0x95   :  { %v69_v8 = vmul.f32 0.03125, %v66_v7  ;;  %v72_v9 = vmul.f32 %v70_v6, %v70_v6 }
  0x97   :  { %v71_v10 = vsub.f32 %v1376_v1, %v69_v8  ;;  %v74_v11 = vsel %vm60_vm0, %v72_v9, 0.0 }
  0x98   :  { %75 = vadd.xlane.f32.xlu1 %v74_v11 }
  0x99   :  { %v73_v12 = vmul.f32 %v71_v10, %v71_v10 }
  0x9b   :  { %v77_v13 = vsel %vm60_vm0, %v73_v12, 0.0  ;;  %v214_v12 = vld [vmem:[%s1680_s12] sm:$0xff] }
  0x9c   :  { %78 = vadd.xlane.f32.xlu1 %v77_v13 }
 0x125   :  { %v76_v20 = vpop.xlane.xlu1 %75 }
 0x126   :  { %v80_v21 = vmul.f32 0.03125, %v76_v20 }
 0x128   :  { %v82_v22 = vadd.f32 1e-05, %v80_v21 }
 0x129   :  { %v79_v23 = vpop.xlane.xlu1 %78 }
 0x12a   :  { %1215 = vrsqrt.f32 %v82_v22  ;;  %v81_v24 = vmul.f32 0.03125, %v79_v23 }
 0x12c   :  { %v83_v25 = vadd.f32 1e-05, %v81_v24  ;;  %v218_v24 = vld [vmem:[%s1680_s12 + $0x20] sm:$0xff] }
 0x12e   :  { %1217 = vrsqrt.f32 %v83_v25 }
 0x134   :  { %v1216_v26 = vpop.eup %1215 }
 0x135   :  { %v86_v28 = vmul.f32 %v1216_v26, %v70_v6 }
 0x137   :  { %v94_v30 = vmul.f32 %v1401_v27, %v86_v28 }
 0x138   :  { %v1218_v31 = vpop.eup %1217 }
 0x139   :  { %v102_v32 = vadd.f32 %v1406_v29, %v94_v30  ;;  %v87_v33 = vmul.f32 %v1218_v31, %v71_v10  ;;  %v219_v30 = vld [vmem:[%s1680_s12 + $0x28] sm:$0xff] }
 0x13b   :  { %1072 = vmatprep.mubr.msk.f32.mxu0 %vm60_vm0, %v102_v32  ;;  %v95_v34 = vmul.f32 %v1401_v27, %v87_v33  ;;  %v221_v33 = vld [vmem:[%s1680_s12 + $0x38] sm:$0xff]  ;;  %s1284_s12 = smov 64  }
 0x13d   :  { %v103_v35 = vadd.f32 %v1406_v29, %v95_v34 }
 0x13f   :  { %1073 = vmatmul.mubr.msk.f32.vlgmr.msra.gmra.mrb[0].mxu0 %vm60_vm0, %v103_v35 }
 0x212   :  { %v1074_v37 = vpop.f32.mrb[0].mxu0 }
 0x213   :  { %v1417_v38 = vadd.f32 %v1074_v37, %v986_v36  ;;  %v187_v39 = vpop.f32.mrb[1].mxu0 }
 0x214   :  { %v1425_v42 = vadd.f32 %v986_v36, %v187_v39 }
 0x215   :  { %v197_v43 = vmul.f32 0.35355338, %v1417_v38  ;;  %v207_v56 = vmul.f32 %v199_v53, %v1417_v38  ;;  %v209_v57 = vmul.f32 %v201_v54, %v1417_v38  ;;  %v211_v61 = vmul.f32 %v203_v59, %v1417_v38 }
 0x216   :  { %v206_v44 = vmul.f32 %v198_v40, %v1425_v42  ;;  %v208_v45 = vmul.f32 %v200_v41, %v1425_v42  ;;  %v196_v46 = vmul.f32 0.35355338, %v1425_v42  ;;  %v1210_v47 = vpack.i.bf16 %v1417_v38, %v1425_v42 }
 0x217   :  { %v210_v58 = vmul.f32 %v202_v55, %v1425_v42  ;;  %v212_v62 = vmul.f32 %v204_v60, %v1425_v42  ;;  %v213_v2 = vmul.f32 %v205_v63, %v1417_v38 }
 0x218   :  { %1079 = vmatprep.mubr.msk.f32.mxu0 %vm60_vm0, %v206_v44  ;;  %1082 = vmatprep.mubr.msk.f32.mxu1 %vm60_vm0, %v208_v45  ;;  %v1205_v48 = vpack.i.bf16 %v197_v43, %v196_v46 }
 0x21a   :  { %1206 = vrot.lane.b32.xlu0 %v1205_v48, %s1283_s2 }
 0x28c   :  { %v1207_v49 = vpop.permute.xlu0 %1206 }
 0x28d   :  { %v1209_v50 = vunpack.i.h.bf16 %v1207_v49  ;;  %v1208_v51 = vunpack.i.l.bf16 %v1207_v49 }
 0x28f   :  { %v1156_v52 = vpack.c.bf16 %v1209_v50, %v1208_v51 }
 0x291   :  { %1158 = vmatprep.subr.msk.bf16.mxu0 %vm1157_vm1, %v1156_v52  ;;  %1198 = vmatprep.subr.msk.bf16.mxu1 %vm1157_vm1, %v1156_v52 }
 0x292   :  { %1161 = vmatpush3.bf16.xpose.msk.msra.mxu0 %vm1157_vm1, %v1156_v52  ;;  %1199 = vmatpush3.bf16.xpose.msk.msra.mxu1 %vm1157_vm1, %v1156_v52 }
 0x299   :  { %1080 = vmatmul.mubr.msk.f32.vlgmr.msra.gmra.mrb[2].mxu0 %vm60_vm0, %v207_v56  ;;  %1083 = vmatmul.mubr.msk.f32.vlgmr.msra.gmra.mrb[0].mxu1 %vm60_vm0, %v209_v57 }
 0x29a   :  { %1085 = vmatprep.mubr.msk.f32.mxu1 %vm60_vm0, %v210_v58 }
 0x29d   :  { %1086 = vmatmul.mubr.msk.f32.gmra.mrb[2].mxu1 %vm60_vm0, %v211_v61 }
 0x29e   :  { %1088 = vmatprep.mubr.msk.f32.mxu1 %vm60_vm0, %v212_v62 }
 0x2a1   :  { %1089 = vmatmul.mubr.msk.f32.gmra.mrb[4].mxu1 %vm60_vm0, %v213_v2 }
 0x36c   :  { %v1081_v4 = vpop.f32.mrb[2].mxu0  ;;  %v1084_v6 = vpop.f32.mrb[0].mxu1 }
 0x36d   :  { %v328_v7 = vadd.f32 %v1081_v4, %v215_v3  ;;  %v322_v8 = vpop.f32.mrb[3].mxu0  ;;  %v332_v9 = vpop.f32.mrb[1].mxu1  ;;  %v338_v10 = vadd.f32 %v1084_v6, %v217_v5 }
 0x36e   :  { %v323_v15 = vadd.f32 %v322_v8, %v214_v12  ;;  %v333_v22 = vadd.f32 %v332_v9, %v216_v18 }
 0x36f   :  { %v365_v11 = vsel %vm361_vm2, %v328_v7, -inf  ;;  %v371_v16 = vsel %vm361_vm2, %v338_v10, -inf }
 0x370   :  { %v1087_v13 = vpop.f32.mrb[2].mxu1  ;;  %366 = vmax.xlane.f32.xlu1 %v365_v11  ;;  %v362_v23 = vsel %vm361_vm2, %v323_v15, -inf  ;;  %v368_v28 = vsel %vm361_vm2, %v333_v22, -inf }
 0x371   :  { %v342_v14 = vpop.f32.mrb[3].mxu1  ;;  %v348_v31 = vadd.f32 %v1087_v13, %v219_v30 }
 0x372   :  { %v343_v26 = vadd.f32 %v342_v14, %v218_v24 }
 0x373   :  { %v377_v35 = vsel %vm361_vm2, %v348_v31, -inf }
 0x374   :  { %v1090_v19 = vpop.f32.mrb[4].mxu1  ;;  %372 = vmax.xlane.f32.xlu1 %v371_v16  ;;  %v374_v32 = vsel %vm361_vm2, %v343_v26, -inf }
 0x375   :  { %v352_v20 = vpop.f32.mrb[5].mxu1  ;;  %v358_v34 = vadd.f32 %v1090_v19, %v221_v33 }
 0x376   :  { %v353_v21 = vadd.f32 %v352_v20, %v220_v17 }
 0x377   :  { %v383_v36 = vsel %vm361_vm2, %v358_v34, -inf }
 0x378   :  { %363 = vmax.xlane.f32.xlu1 %v362_v23  ;;  %v380_v25 = vsel %vm361_vm2, %v353_v21, -inf }
 0x379   :  { %381 = vmax.xlane.f32.xlu0 %v380_v25 }
 0x37c   :  { %369 = vmax.xlane.f32.xlu1 %v368_v28 }
 0x380   :  { %375 = vmax.xlane.f32.xlu1 %v374_v32 }
 0x384   :  { %378 = vmax.xlane.f32.xlu1 %v377_v35 }
 0x388   :  { %384 = vmax.xlane.f32.xlu1 %v383_v36 }
 0x3fd   :  { %v367_v37 = vpop.xlane.xlu1 %366 }
 0x3fe   :  { %v387_v39 = vsub.f32 %v328_v7, %v367_v37 }
 0x400   :  { %v396_v40 = vmul.f32 1.442695, %v387_v39 }
 0x401   :  { %v373_v41 = vpop.xlane.xlu1 %372 }
 0x402   :  { %1219 = vpow2.f32 %v396_v40  ;;  %v389_v43 = vsub.f32 %v338_v10, %v373_v41 }
 0x404   :  { %v400_v44 = vmul.f32 1.442695, %v389_v43 }
 0x405   :  { %v364_v45 = vpop.xlane.xlu1 %363 }
 0x406   :  { %1221 = vpow2.f32 %v400_v44  ;;  %v386_v46 = vsub.f32 %v323_v15, %v364_v45  ;;  %v382_v57 = vpop.xlane.xlu0 %381 }
 0x407   :  { %v392_v62 = vsub.f32 %v353_v21, %v382_v57 }
 0x408   :  { %v394_v48 = vmul.f32 1.442695, %v386_v46 }
 0x409   :  { %v370_v49 = vpop.xlane.xlu1 %369  ;;  %v406_v7 = vmul.f32 1.442695, %v392_v62 }
 0x40a   :  { %1223 = vpow2.f32 %v394_v48  ;;  %v388_v50 = vsub.f32 %v333_v22, %v370_v49 }
 0x40c   :  { %v1499_v51 = vpop.eup %1219  ;;  %v398_v52 = vmul.f32 1.442695, %v388_v50 }
 0x40d   :  { %v376_v53 = vpop.xlane.xlu1 %375  ;;  %v413_v54 = vsel %vm361_vm2, %v1499_v51, 0.0 }
 0x40e   :  { %1225 = vpow2.f32 %v398_v52  ;;  %414 = vadd.xlane.f32.xlu1 %v413_v54  ;;  %v390_v56 = vsub.f32 %v343_v26, %v376_v53 }
 0x410   :  { %v1503_v55 = vpop.eup %1221  ;;  %v402_v63 = vmul.f32 1.442695, %v390_v56 }
 0x411   :  { %v379_v58 = vpop.xlane.xlu1 %378  ;;  %v419_v59 = vsel %vm361_vm2, %v1503_v55, 0.0 }
 0x412   :  { %v391_v60 = vsub.f32 %v348_v31, %v379_v58  ;;  %420 = vadd.xlane.f32.xlu1 %v419_v59 }
 0x414   :  { %v1224_v61 = vpop.eup %1223  ;;  %v404_v2 = vmul.f32 1.442695, %v391_v60 }
 0x415   :  { %v385_v3 = vpop.xlane.xlu1 %384  ;;  %v410_v4 = vsel %vm361_vm2, %v1224_v61, 0.0 }
 0x416   :  { %1227 = vpow2.f32 %v404_v2  ;;  %v393_v5 = vsub.f32 %v358_v34, %v385_v3  ;;  %411 = vadd.xlane.f32.xlu1 %v410_v4 }
 0x417   :  { %1229 = vpow2.f32 %v402_v63 }
 0x418   :  { %v1508_v6 = vpop.eup %1225  ;;  %v408_v8 = vmul.f32 1.442695, %v393_v5 }
 0x419   :  { %v416_v9 = vsel %vm361_vm2, %v1508_v6, 0.0 }
 0x41a   :  { %1231 = vpow2.f32 %v408_v8  ;;  %417 = vadd.xlane.f32.xlu1 %v416_v9 }
 0x41b   :  { %1233 = vpow2.f32 %v406_v7 }
 0x420   :  { %v1512_v10 = vpop.eup %1227 }
 0x421   :  { %v425_v11 = vsel %vm361_vm2, %v1512_v10, 0.0  ;;  %v1516_v12 = vpop.eup %1229 }
 0x422   :  { %426 = vadd.xlane.f32.xlu1 %v425_v11  ;;  %v422_v14 = vsel %vm361_vm2, %v1516_v12, 0.0  ;;  %v633_v11 = vld [vmem:[%s1671_s3] sm:$0xff] }
 0x424   :  { %v1518_v13 = vpop.eup %1231 }
 0x425   :  { %v431_v15 = vsel %vm361_vm2, %v1518_v13, 0.0  ;;  %v1524_v16 = vpop.eup %1233 }
 0x426   :  { %423 = vadd.xlane.f32.xlu1 %v422_v14  ;;  %432 = vadd.xlane.f32.xlu0 %v431_v15  ;;  %v428_v17 = vsel %vm361_vm2, %v1524_v16, 0.0  ;;  %v635_v14 = vld [vmem:[%s1671_s3 + $0x10] sm:$0xff] }
 0x42a   :  { %429 = vadd.xlane.f32.xlu1 %v428_v17 }
 0x43b   :  { %1211 = vrot.lane.b32.xlu1 %v1210_v47, %s1284_s12 }
 0x49b   :  { %v415_v18 = vpop.xlane.xlu1 %414 }
 0x49f   :  { %v421_v19 = vpop.xlane.xlu1 %420 }
 0x4a3   :  { %v412_v20 = vpop.xlane.xlu1 %411 }
 0x4a4   :  { %1235 = vrcp.f32 %v412_v20 }
 0x4a5   :  { %1237 = vrcp.f32 %v415_v18 }
 0x4a7   :  { %v418_v21 = vpop.xlane.xlu1 %417 }
 0x4a8   :  { %1239 = vrcp.f32 %v418_v21 }
 0x4a9   :  { %1241 = vrcp.f32 %v421_v19 }
 0x4ae   :  { %v1236_v22 = vpop.eup %1235 }
 0x4af   :  { %v442_v23 = vmul.f32 %v1236_v22, %v412_v20  ;;  %v427_v24 = vpop.xlane.xlu1 %426  ;;  %v1238_v26 = vpop.eup %1237  ;;  %v611_v20 = vld [vmem:[%s1681_s13] sm:$0xff] }
 0x4b0   :  { %1243 = vrcp.f32 %v427_v24  ;;  %v443_v38 = vmul.f32 %v1238_v26, %v415_v18  ;;  %v612_v18 = vld [vmem:[%s1681_s13 + $0x8] sm:$0xff] }
 0x4b1   :  { %v450_v25 = vsub.f32 2.0, %v442_v23 }
 0x4b2   :  { %v1240_v32 = vpop.eup %1239  ;;  %v451_v35 = vsub.f32 2.0, %v443_v38 }
 0x4b3   :  { %v458_v28 = vmul.f32 %v1236_v22, %v450_v25  ;;  %v433_v30 = vpop.xlane.xlu0 %432  ;;  %v424_v31 = vpop.xlane.xlu1 %423  ;;  %v444_v33 = vmul.f32 %v1240_v32, %v418_v21  ;;  %v613_v21 = vld [vmem:[%s1681_s13 + $0x10] sm:$0xff] }
 0x4b4   :  { %1245 = vrcp.f32 %v433_v30  ;;  %v1242_v47 = vpop.eup %1241  ;;  %v459_v44 = vmul.f32 %v1238_v26, %v451_v35  ;;  %v618_v35 = vld [vmem:[%s1681_s13 + $0x38] sm:$0xff] }
 0x4b5   :  { %v466_v42 = vmul.f32 %v1224_v61, %v458_v28  ;;  %1247 = vrcp.f32 %v424_v31  ;;  %v445_v36 = vmul.f32 %v1242_v47, %v421_v19  ;;  %v452_v39 = vsub.f32 2.0, %v444_v33  ;;  %v614_v19 = vld [vmem:[%s1681_s13 + $0x18] sm:$0xff] }
 0x4b6   :  { %v467_v54 = vmul.f32 %v1499_v51, %v459_v44 }
 0x4b7   :  { %1095 = vmatprep.mubr.msk.f32.mxu0 %vm361_vm2, %v466_v42  ;;  %v430_v34 = vpop.xlane.xlu1 %429  ;;  %v453_v46 = vsub.f32 2.0, %v445_v36  ;;  %v460_v52 = vmul.f32 %v1240_v32, %v452_v39  ;;  %v615_v32 = vld [vmem:[%s1681_s13 + $0x20] sm:$0xff] }
 0x4b8   :  { %1249 = vrcp.f32 %v430_v34 }
 0x4b9   :  { %v461_v57 = vmul.f32 %v1242_v47, %v453_v46  ;;  %v468_v61 = vmul.f32 %v1508_v6, %v460_v52 }
 0x4ba   :  { %v1244_v37 = vpop.eup %1243 }
 0x4bb   :  { %v1212_v40 = vpop.permute.xlu1 %1211  ;;  %v447_v48 = vmul.f32 %v1244_v37, %v427_v24  ;;  %v469_v3 = vmul.f32 %v1503_v55, %v461_v57 }
 0x4bc   :  { %v1214_v41 = vunpack.i.h.bf16 %v1212_v40  ;;  %v1213_v43 = vunpack.i.l.bf16 %v1212_v40 }
 0x4bd   :  { %v455_v58 = vsub.f32 2.0, %v447_v48  ;;  %v57_v48 = vstv %s1682_s14 }
 0x4be   :  { %v1246_v45 = vpop.eup %1245  ;;  %v1162_v49 = vpack.c.bf16 %v1214_v41, %v1213_v43 }
 0x4bf   :  { %v1248_v50 = vpop.eup %1247  ;;  %v449_v59 = vmul.f32 %v1246_v45, %v433_v30  ;;  %v463_v4 = vmul.f32 %v1244_v37, %v455_v58  ;;  %v616_v30 = vld [vmem:[%s1681_s13 + $0x28] sm:$0xff]  ;;  %v617_v37 = vld [vmem:[%s1681_s13 + $0x30] sm:$0xff] }
 0x4c0   :  { %v446_v53 = vmul.f32 %v1248_v50, %v424_v31  ;;  %1163 = vmatprep.subr.bf16.mxu0 %v1162_v49 }
 0x4c1   :  { %1165 = vmatpush3.bf16.msra.mxu0 %v1162_v49  ;;  %v457_v5 = vsub.f32 2.0, %v449_v59  ;;  %v471_v6 = vmul.f32 %v1512_v10, %v463_v4  ;;  %v1007_v49 = vld [vmem:[%s1672_s4] ss:$0 sm:$0xff]  ;;  %s973_s4 = sshll.u32 %s1285_s1, 4  ;;  %s974_s4 = int_to_ptr.vmem [resolvable:$true] %s973_s4 }
 0x4c2   :  { %v1250_v56 = vpop.eup %1249  ;;  %v454_v60 = vsub.f32 2.0, %v446_v53  ;;  %s1259_s13 = scalar_lea.vmem %s974_s4, 256  ;;  %p1264_p1 = scmp.lt.s32.totalorder %s974_s4, %s974_s4 }
 0x4c3   :  { %v448_v62 = vmul.f32 %v1250_v56, %v430_v34  ;;  %v465_v8 = vmul.f32 %v1246_v45, %v457_v5  ;;  %p1260_p0 = scmp.ne.s32.totalorder %s974_s4, %s1259_s13  ;;  %p1265_p2 = scmp.lt.s32.totalorder %s1259_s13, %s1259_s13 }
 0x4c4   :  { %v462_v63 = vmul.f32 %v1248_v50, %v454_v60  ;;  %1096 = vmatmul.mubr.msk.f32.vlgmr.msra.gmra.mrb[4].mxu0 %vm361_vm2, %v467_v54  ;;  %v58_v50 = vmul.f32 %v57_v48, %v1371_v0  ;;  %v59_v54 = vmul.f32 %v57_v48, %v1376_v1 }
 0x4c5   :  { %v456_v2 = vsub.f32 2.0, %v448_v62  ;;  %1098 = vmatprep.mubr.msk.f32.mxu0 %vm361_vm2, %v468_v61  ;;  %v473_v55 = vmul.f32 %v1518_v13, %v465_v8  ;;  %v636_v13 = vld [vmem:[%s1671_s3 + $0x18] sm:$0xff]  ;;  %v758_v8 = vld [vmem:[%s1675_s7 + $0x8] sm:$0xff]  ;;  %p1266_p3 = por %p1265_p2, %p1264_p1 }
 0x4c6   :  { %v470_v51 = vmul.f32 %v1516_v12, %v462_v63  ;;  %v634_v12 = vld [vmem:[%s1671_s3 + $0x8] sm:$0xff]  ;;  %v1170_v15 = vpack.c.bf16 %v636_v13, %v635_v14 }
 0x4c7   :  { %v464_v7 = vmul.f32 %v1250_v56, %v456_v2  ;;  %v1166_v10 = vpack.c.bf16 %v634_v12, %v633_v11  ;;  %v760_v11 = vld [vmem:[%s1675_s7 + $0x18] sm:$0xff]  ;;  %p1267_p4 = pnand %p1266_p3, %p1260_p0 }
 0x4c8   :  { %1099 = vmatmul.mubr.msk.f32.gmra.mrb[6].mxu0 %vm361_vm2, %v469_v3 }
 0x4c9   :  { %1101 = vmatprep.mubr.msk.f32.mxu0 %vm361_vm2, %v470_v51  ;;  %v472_v9 = vmul.f32 %v1524_v16, %v464_v7  ;;  %1167 = vmatprep.subr.bf16.mxu1 %v1166_v10 }
 0x4ca   :  { %1169 = vmatpush3.bf16.msra.mxu1 %v1166_v10 }
 0x4cb   :  { %1171 = vmatprep.subr.bf16.mxu1 %v1170_v15 }
 0x4cc   :  { %1102 = vmatmul.mubr.msk.f32.gmra.mrb[8].mxu0 %vm361_vm2, %v471_v6  ;;  %v757_v6 = vld [vmem:[%s1675_s7] sm:$0xff] }
 0x4cd   :  { %1104 = vmatprep.mubr.msk.f32.mxu0 %vm361_vm2, %v472_v9  ;;  %v1174_v9 = vpack.c.bf16 %v758_v8, %v757_v6 }
 0x4ce   :  { %1173 = vmatpush3.bf16.msra.mxu1 %v1170_v15 }
 0x4cf   :  { %1175 = vmatprep.subr.bf16.mxu0 %v1174_v9 }
 0x4d0   :  { %1105 = vmatmul.mubr.msk.f32.gmra.mrb[10].mxu0 %vm361_vm2, %v473_v55  ;;  %v759_v55 = vld [vmem:[%s1675_s7 + $0x10] sm:$0xff] }
 0x4d1   :  { %1177 = vmatpush3.bf16.msra.mxu0 %v1174_v9  ;;  %v1178_v12 = vpack.c.bf16 %v760_v11, %v759_v55 }
 0x4d3   :  { %1179 = vmatprep.subr.bf16.mxu0 %v1178_v12 }
 0x4d5   :  { %1181 = vmatpush3.bf16.msra.mxu0 %v1178_v12 }
 0x597   :  { %v1097_v16 = vpop.f32.mrb[4].mxu0 }
 0x598   :  { %v572_v17 = vpop.f32.mrb[5].mxu0  ;;  %v620_v23 = vmul.f32 %v1097_v16, %v612_v18 }
 0x599   :  { %v619_v26 = vmul.f32 %v611_v20, %v572_v17 }
 0x59b   :  { %v1100_v22 = vpop.f32.mrb[6].mxu0 }
 0x59c   :  { %v622_v24 = vmul.f32 %v1100_v22, %v614_v19  ;;  %v582_v25 = vpop.f32.mrb[7].mxu0 }
 0x59d   :  { %v621_v28 = vmul.f32 %v613_v21, %v582_v25 }
 0x59e   :  { %v628_v31 = vadd.f32 %v622_v24, %v620_v23 }
 0x59f   :  { %v627_v38 = vadd.f32 %v621_v28, %v619_v26  ;;  %v1103_v42 = vpop.f32.mrb[8].mxu0  ;;  %v867_v26 = vld [vmem:[%s1677_s9] sm:$0xff]  ;;  %v868_v28 = vld [vmem:[%s1677_s9 + $0x8] sm:$0xff] }
 0x5a0   :  { %v624_v47 = vmul.f32 %v1103_v42, %v616_v30  ;;  %v592_v33 = vpop.f32.mrb[9].mxu0  ;;  %v1182_v30 = vpack.c.bf16 %v868_v28, %v867_v26 }
 0x5a1   :  { %v623_v34 = vmul.f32 %v615_v32, %v592_v33  ;;  %v871_v32 = vld [vmem:[%s1677_s9 + $0x20] sm:$0xff]  ;;  %v874_v33 = vld [vmem:[%s1677_s9 + $0x38] sm:$0xff] }
 0x5a2   :  { %v630_v36 = vadd.f32 %v628_v31, %v624_v47  ;;  %1183 = vmatprep.subr.bf16.mxu1 %v1182_v30  ;;  %v873_v47 = vld [vmem:[%s1677_s9 + $0x30] sm:$0xff] }
 0x5a3   :  { %v629_v39 = vadd.f32 %v627_v38, %v623_v34  ;;  %v1106_v40 = vpop.f32.mrb[10].mxu0  ;;  %v872_v38 = vld [vmem:[%s1677_s9 + $0x28] sm:$0xff]  ;;  %v1194_v34 = vpack.c.bf16 %v874_v33, %v873_v47 }
 0x5a4   :  { %v626_v41 = vmul.f32 %v1106_v40, %v618_v35  ;;  %v602_v43 = vpop.f32.mrb[11].mxu0  ;;  %v1190_v42 = vpack.c.bf16 %v872_v38, %v871_v32  ;;  %v1010_v35 = vld [vmem:[%s1676_s8] ss:$0 sm:$0xff] }
 0x5a5   :  { %v625_v44 = vmul.f32 %v617_v37, %v602_v43 }
 0x5a6   :  { %v632_v45 = vadd.f32 %v630_v36, %v626_v41 }
 0x5a7   :  { %v631_v46 = vadd.f32 %v629_v39, %v625_v44 }
 0x5a9   :  { %1115 = vmatprep.mubr.msk.f32.mxu1 %vm60_vm0, %v631_v46 }
 0x5aa   :  { %1116 = vmatmul.mubr.msk.f32.vlgmr.msra.gmra.mrb[6].mxu1 %vm60_vm0, %v632_v45 }
 0x5ab   :  { %1185 = vmatpush3.bf16.msra.mxu1 %v1182_v30 }
 0x67d   :  { %v1117_v52 = vpop.f32.mrb[6].mxu1 }
 0x67e   :  { %v716_v53 = vpop.f32.mrb[7].mxu1  ;;  %v722_v56 = vadd.f32 %v1117_v52, %v1007_v49 }
 0x67f   :  { %v717_v57 = vadd.f32 %v1007_v49, %v716_v53 }
 0x680   :  { %v1594_v59 = vadd.f32 %v722_v56, %v59_v54 }
 0x681   :  { %v1592_v58 = vadd.f32 %v717_v57, %v58_v50 }
 0x682   :  { %v730_v61 = vsel %vm60_vm0, %v1594_v59, 0.0 }
 0x683   :  { %v727_v60 = vsel %vm60_vm0, %v1592_v58, 0.0 }
 0x684   :  { %728 = vadd.xlane.f32.xlu0 %v727_v60 }
 0x688   :  { %731 = vadd.xlane.f32.xlu0 %v730_v61 }
 0x711   :  { %v729_v62 = vpop.xlane.xlu0 %728 }
 0x712   :  { %v733_v0 = vmul.f32 0.03125, %v729_v62 }
 0x714   :  { %v735_v63 = vsub.f32 %v1592_v58, %v733_v0 }
 0x715   :  { %v732_v2 = vpop.xlane.xlu0 %731 }
 0x716   :  { %v734_v1 = vmul.f32 0.03125, %v732_v2  ;;  %v737_v3 = vmul.f32 %v735_v63, %v735_v63  ;;  %v1013_v2 = vld [vmem:[%s1678_s10] ss:$0 sm:$0xff] }
 0x718   :  { %v736_v4 = vsub.f32 %v1594_v59, %v734_v1  ;;  %v739_v5 = vsel %vm60_vm0, %v737_v3, 0.0 }
 0x719   :  { %740 = vadd.xlane.f32.xlu0 %v739_v5 }
 0x71a   :  { %v738_v51 = vmul.f32 %v736_v4, %v736_v4 }
 0x71c   :  { %v742_v7 = vsel %vm60_vm0, %v738_v51, 0.0 }
 0x71d   :  { %743 = vadd.xlane.f32.xlu0 %v742_v7 }
 0x7a6   :  { %v741_v10 = vpop.xlane.xlu0 %740 }
 0x7a7   :  { %v745_v14 = vmul.f32 0.03125, %v741_v10 }
 0x7a9   :  { %v747_v13 = vadd.f32 1e-05, %v745_v14 }
 0x7aa   :  { %v744_v15 = vpop.xlane.xlu0 %743 }
 0x7ab   :  { %1251 = vrsqrt.f32 %v747_v13  ;;  %v746_v16 = vmul.f32 0.03125, %v744_v15 }
 0x7ad   :  { %v748_v17 = vadd.f32 1e-05, %v746_v16 }
 0x7af   :  { %1253 = vrsqrt.f32 %v748_v17 }
 0x7b5   :  { %v1252_v18 = vpop.eup %1251 }
 0x7b6   :  { %v751_v19 = vmul.f32 %v1252_v18, %v735_v63 }
 0x7b8   :  { %v753_v20 = vmul.f32 %v1401_v27, %v751_v19 }
 0x7b9   :  { %v1254_v21 = vpop.eup %1253 }
 0x7ba   :  { %v752_v22 = vmul.f32 %v1254_v21, %v736_v4  ;;  %v755_v23 = vadd.f32 %v1406_v29, %v753_v20 }
 0x7bc   :  { %v754_v24 = vmul.f32 %v1401_v27, %v752_v22  ;;  %1126 = vmatprep.mubr.msk.f32.mxu0 %vm60_vm0, %v755_v23  ;;  %v869_v27 = vld [vmem:[%s1677_s9 + $0x10] sm:$0xff] }
 0x7be   :  { %v756_v25 = vadd.f32 %v1406_v29, %v754_v24  ;;  %v870_v29 = vld [vmem:[%s1677_s9 + $0x18] sm:$0xff] }
 0x7bf   :  { %v1186_v31 = vpack.c.bf16 %v870_v29, %v869_v27 }
 0x7c0   :  { %1127 = vmatmul.mubr.msk.f32.vlgmr.msra.gmra.mrb[12].mxu0 %vm60_vm0, %v756_v25 }
 0x7c1   :  { %1187 = vmatprep.subr.bf16.mxu1 %v1186_v31 }
 0x7c2   :  { %1189 = vmatpush3.bf16.msra.mxu1 %v1186_v31 }
 0x7c3   :  { %1191 = vmatprep.subr.bf16.mxu1 %v1190_v42 }
 0x7c6   :  { %1193 = vmatpush3.bf16.msra.mxu1 %v1190_v42 }
 0x7c7   :  { %1195 = vmatprep.subr.bf16.mxu1 %v1194_v34 }
 0x7ca   :  { %1197 = vmatpush3.bf16.msra.mxu1 %v1194_v34 }
 0x893   :  { %v1128_v36 = vpop.f32.mrb[12].mxu0 }
 0x894   :  { %v846_v37 = vadd.f32 %v1128_v36, %v1010_v35  ;;  %v840_v39 = vpop.f32.mrb[13].mxu0 }
 0x895   :  { %v841_v40 = vadd.f32 %v1010_v35, %v840_v39 }
 0x896   :  { %v850_v41 = vmul.f32 %v846_v37, %v846_v37 }
 0x897   :  { %v849_v43 = vmul.f32 %v841_v40, %v841_v40 }
 0x898   :  { %v852_v44 = vmul.f32 %v850_v41, %v846_v37 }
 0x899   :  { %v851_v45 = vmul.f32 %v849_v43, %v841_v40 }
 0x89a   :  { %v854_v46 = vmul.f32 0.044715, %v852_v44 }
 0x89b   :  { %v853_v48 = vmul.f32 0.044715, %v851_v45 }
 0x89c   :  { %v856_v49 = vadd.f32 %v854_v46, %v846_v37 }
 0x89d   :  { %v855_v50 = vadd.f32 %v853_v48, %v841_v40 }
 0x89e   :  { %v858_v52 = vmul.f32 0.7978846, %v856_v49 }
 0x89f   :  { %v857_v53 = vmul.f32 0.7978846, %v855_v50 }
 0x8a0   :  { %1255 = vtanh.f32 %v858_v52 }
 0x8a1   :  { %1257 = vtanh.f32 %v857_v53 }
 0x8aa   :  { %v1256_v54 = vpop.eup %1255 }
 0x8ab   :  { %v1258_v56 = vpop.eup %1257  ;;  %v862_v57 = vadd.f32 1.0, %v1256_v54 }
 0x8ac   :  { %v861_v60 = vadd.f32 1.0, %v1258_v56 }
 0x8ad   :  { %v864_v61 = vmul.f32 0.5, %v862_v57 }
 0x8ae   :  { %v863_v62 = vmul.f32 0.5, %v861_v60 }
 0x8af   :  { %v866_v63 = vmul.f32 %v864_v61, %v846_v37 }
 0x8b0   :  { %v865_v0 = vmul.f32 %v863_v62, %v841_v40 }
 0x8b2   :  { %1145 = vmatprep.mubr.msk.f32.mxu1 %vm882_vm3, %v865_v0 }
 0x8b3   :  { %1146 = vmatmul.mubr.msk.f32.vlgmr.msra.gmra.mrb[8].mxu1 %vm882_vm3, %v866_v63 }
 0x986   :  { %v1147_v1 = vpop.f32.mrb[8].mxu1 }
 0x987   :  { %v961_v3 = vadd.f32 %v1147_v1, %v1013_v2  ;;  %v955_v4 = vpop.f32.mrb[9].mxu1 }
 0x988   :  { %v956_v5 = vadd.f32 %v1013_v2, %v955_v4 }
 0x989   :  { %v965_v51 = vadd.f32 %v961_v3, %v1594_v59 }
 0x98a   :  { %v964_v7 = vadd.f32 %v956_v5, %v1592_v58 }
 0x98b   :  { %967 = vst.msk [vmem:[#allocation3 + $0x8] sm:$0xff] %vm60_vm0, %v965_v51 }
 0x98c   :  { %966 = vst.msk [vmem:[#allocation3] sm:$0xff] %vm60_vm0, %v964_v7 }
 0x98d   :  { %1270 = shalt.err (!%p1267_p4)
}
 0x98e   :  { %s1271_s16 = scalar_lea.hbm %s1683_s15, 256 }
 0x98f   :  { %p1272_p5 = scmp.ne.s32.totalorder %s1683_s15, %s1271_s16  ;;  %p1275_p6 = scmp.lt.u32.totalorder %s1271_s16, %s1683_s15 }
 0x991   :  { %p1277_p7 = pnand %p1275_p6, %p1272_p5 }
 0x993   :  { %1280 = shalt.err (!%p1277_p7)
}
 0x994   :  { %s1286_s7 = smov 128   ;;  %s1287_s18 = smov 8  }
 0x995   :  { %979 = dma.vmem_to_hbm [thread:$0]  %s974_s4, 256, %s1683_s15, [#allocation4], %s1286_s7, %s1286_s7, %s1287_s18  }
 0x996   :  { %1281 = dma.done.wait [#allocation4], 256  }
 0x997   :  { %1282 = vsyncadd [#allocation4], 4294967040 }
 0x998   :  { %983 = vsyncpa [#allocation4], 1 }

</bundles_post_ra>
